<compile_context>
chip_gen: v7x
topology: tpu7x:2x2x1
jax: 0.10.0
libtpu: 0.0.40
codegen_flags: <defaults>
</compile_context>

<pallas_src>
import functools

import jax
import jax.numpy as jnp
from jax.experimental import pallas as pl
from jax.experimental.pallas import tpu as pltpu

LAYERS = [4, 80, 80, 80, 80, 80, 80, 1]
PAD = 128    # lane width every hidden layer is padded to
IN_PAD = 8   # compact HBM lane width for the 4-feature input


def _round_up(a, m):
    return ((a + m - 1) // m) * m


def _default_tanh_dtype():
    """bf16 tanh on chips with a bf16 VPU/EUP (v6e, v7x); f32 otherwise."""
    try:
        kind = jax.devices()[0].device_kind.lower()
    except Exception:
        return jnp.float32
    if any(v in kind for v in ("v2", "v3", "v4", "v5")):
        return jnp.float32
    return jnp.bfloat16


def _mlp_kernel(x_ref, w_ref, b_ref, o_ref, h_ref, *,
                n_layers, in_dim, chunk_m, n_chunks, tanh_dtype):
    """One batch tile of the whole MLP.

    x_ref: (tm, IN_PAD)      bf16  compact input (lanes >= in_dim are zero)
    w_ref: (L, PAD, PAD)     bf16  zero-padded weights, stored (in, out)
    b_ref: (L, 1, PAD)       f32   zero-padded biases
    o_ref: (tm, PAD)         f32   lane-dense output (column 0 is the answer)
    h_ref: (tm, PAD)         bf16  VMEM activation scratch
    """
    # ---- Layer 0 (4 -> 80): pure VPU outer-product accumulation. ----
    w0 = w_ref[0, :IN_PAD, :].astype(jnp.float32)           # (IN_PAD, PAD)
    b0 = b_ref[0]                                           # (1, PAD)
    for ci in range(n_chunks):
        rows = pl.ds(ci * chunk_m, chunk_m)
        xc = x_ref[rows, :].astype(jnp.float32)              # (chunk, IN_PAD)
        z = xc[:, 0:1] * w0[0:1, :]                          # (chunk, PAD)
        for k in range(1, in_dim):
            z = z + xc[:, k:k + 1] * w0[k:k + 1, :]
        z = z + b0
        h_ref[rows, :] = jnp.tanh(z.astype(tanh_dtype)).astype(jnp.bfloat16)

    # ---- Hidden layers 1 .. L-2 (80 -> 80): bf16 MXU, f32 accumulate. ----
    # Chunked over M so the f32 accumulator stays in-register and the EUP
    # tanh of chunk i overlaps the MXU streaming of chunk i+1 (same RHS).
    for li in range(1, n_layers - 1):
        wl = w_ref[li]                                       # (PAD, PAD) bf16
        bl = b_ref[li]                                       # (1, PAD)  f32
        for ci in range(n_chunks):
            rows = pl.ds(ci * chunk_m, chunk_m)
            z = jnp.dot(h_ref[rows, :], wl,
                        preferred_element_type=jnp.float32) + bl
            h_ref[rows, :] = jnp.tanh(z.astype(tanh_dtype)).astype(jnp.bfloat16)

    # ---- Final layer (80 -> 1): no activation, lane-dense f32 store. ----
    wl = w_ref[n_layers - 1]
    bl = b_ref[n_layers - 1]
    for ci in range(n_chunks):
        rows = pl.ds(ci * chunk_m, chunk_m)
        z = jnp.dot(h_ref[rows, :], wl,
                    preferred_element_type=jnp.float32) + bl
        o_ref[rows, :] = z


def pack_params(params):
    """Pack per-layer (W (in,out), b (1,out)) f32 params into one bf16 weight
    slab and one f32 bias slab, zero-padded to 128 lanes.

    Hoisted out of dnn_forward (per review): call ONCE at init / outside the
    per-step forward, then pass the packed slabs to every forward call."""
    n_layers = len(params)
    w_packed = jnp.zeros((n_layers, PAD, PAD), jnp.bfloat16)
    b_packed = jnp.zeros((n_layers, 1, PAD), jnp.float32)
    for li, (w, b) in enumerate(params):
        fi, fo = w.shape
        w_packed = w_packed.at[li, :fi, :fo].set(w.astype(jnp.bfloat16))
        b_packed = b_packed.at[li, 0, :fo].set(b.reshape(-1).astype(jnp.float32))
    return w_packed, b_packed


def dnn_forward(x, w_packed, b_packed, *, tile_m=2048, chunk_m=256,
                tanh_dtype=None):
    """x: (N, 4) float.  Returns (N, 1) float32."""
    if tanh_dtype is None:
        tanh_dtype = _default_tanh_dtype()

    N, in_dim = x.shape
    assert in_dim == LAYERS[0]
    n_layers = w_packed.shape[0]

    # Batch tile: as large as possible (amortizes per-grid-step overhead and
    # MXU weight pushes), auto-shrunk for small N.  No forced grid split for
    # tiny batches; large N naturally gives grid >= 2 for v7x's two TCs.
    tile_m = max(8, _round_up(tile_m, 8))
    chunk_m = max(8, _round_up(chunk_m, 8))
    tm = min(tile_m, _round_up(N, 8))
    chunk = min(chunk_m, tm)
    tm = _round_up(tm, chunk)            # tm = whole number of chunks
    n_chunks = tm // chunk
    n_pad = _round_up(N, tm)
    grid = n_pad // tm

    # Compact bf16 input in HBM: 16 B/point instead of 512 B/point.
    x_pad = jnp.pad(x.astype(jnp.bfloat16),
                    ((0, n_pad - N), (0, IN_PAD - in_dim)))

    kernel = functools.partial(
        _mlp_kernel, n_layers=n_layers, in_dim=in_dim, chunk_m=chunk,
        n_chunks=n_chunks, tanh_dtype=tanh_dtype)

    out = pl.pallas_call(
        kernel,
        out_shape=jax.ShapeDtypeStruct((n_pad, PAD), jnp.float32),
        grid_spec=pltpu.PrefetchScalarGridSpec(
            num_scalar_prefetch=0,
            grid=(grid,),
            in_specs=[
                pl.BlockSpec((tm, IN_PAD), lambda i: (i, 0)),
                # Constant index maps: weights/biases are DMA'd once and kept
                # resident across grid steps (no per-step re-fetch).
                pl.BlockSpec((n_layers, PAD, PAD), lambda i: (0, 0, 0)),
                pl.BlockSpec((n_layers, 1, PAD), lambda i: (0, 0, 0)),
            ],
            out_specs=pl.BlockSpec((tm, PAD), lambda i: (i, 0)),
            scratch_shapes=[pltpu.VMEM((tm, PAD), jnp.bfloat16)],
        ),
        compiler_params=pltpu.CompilerParams(
            dimension_semantics=("parallel",),
        ),
    )(x_pad, w_packed, b_packed)

    # Lane-dense output: slice the single real output column here.
    return out[:N, :LAYERS[-1]]


def init_params(key, layers):
    """Deterministic init mimicking torch.nn.Linear default:
    U(-1/sqrt(fan_in), 1/sqrt(fan_in)) for both weight and bias."""
    params = []
    for i in range(len(layers) - 1):
        fan_in, fan_out = layers[i], layers[i + 1]
        key, kw, kb = jax.random.split(key, 3)
        bound = 1.0 / float(fan_in) ** 0.5
        # stored as (in, out) == transpose of torch's (out, in)
        w = jax.random.uniform(kw, (fan_in, fan_out), jnp.float32, -bound, bound)
        b = jax.random.uniform(kb, (1, fan_out), jnp.float32, -bound, bound)
        params.append((w, b))
    return params


def dnn_reference_f32(x, params):
    h = x
    for li, (w, b) in enumerate(params):
        h = h @ w + b
        if li != len(params) - 1:
            h = jnp.tanh(h)
    return h


def dnn_reference_kernel_numerics(x, params, tanh_dtype):
    """Emulates the kernel numerics: bf16-rounded input/weights, f32 layer-0
    accumulation, bf16 MXU hidden layers with f32 accumulate, tanh_dtype."""
    w0, b0 = params[0]
    xb = x.astype(jnp.bfloat16).astype(jnp.float32)
    w0b = w0.astype(jnp.bfloat16).astype(jnp.float32)
    z = xb @ w0b + b0.reshape(-1)
    h = jnp.tanh(z.astype(tanh_dtype)).astype(jnp.bfloat16)
    for li in range(1, len(params)):
        w, b = params[li]
        z = jnp.dot(h, w.astype(jnp.bfloat16),
                    preferred_element_type=jnp.float32) + b.reshape(-1)
        if li != len(params) - 1:
            h = jnp.tanh(z.astype(tanh_dtype)).astype(jnp.bfloat16)
        else:
            h = z
    return h


if __name__ == "__main__":
    key = jax.random.PRNGKey(0)
    key, kx = jax.random.split(key)

    N = 64  # small batch of collocation points, 4 input features each
    x = jax.random.normal(kx, (N, LAYERS[0]), jnp.float32)
    params = init_params(key, LAYERS)

    # Pack parameters ONCE (hoisted out of the forward call).
    w_packed, b_packed = pack_params(params)

    out = dnn_forward(x, w_packed, b_packed)
    out = jax.block_until_ready(out)
    assert out.shape == (N, LAYERS[-1])

    tanh_dtype = _default_tanh_dtype()
    ref_kn = dnn_reference_kernel_numerics(x, params, tanh_dtype).astype(jnp.float32)
    ref_f32 = dnn_reference_f32(x, params)

    # Tight check vs. a reference that emulates the kernel's bf16 numerics.
    assert jnp.allclose(out, ref_kn, atol=2e-2, rtol=2e-2), (
        "mismatch vs kernel-numerics reference, max abs diff = %s"
        % float(jnp.max(jnp.abs(out - ref_kn))))
    # Loose check vs. the pure-f32 math of the original torch module.
    assert jnp.allclose(out, ref_f32, atol=5e-2, rtol=5e-2), (
        "mismatch vs f32 reference, max abs diff = %s"
        % float(jnp.max(jnp.abs(out - ref_f32))))

    print("KERNEL_OK")
</pallas_src>

<mosaic_0001>
module attributes {stable_mosaic.version = 11 : i64} {
  func.func @_mlp_kernel(%arg0: i32, %arg1: memref<64x8xbf16, #tpu.memory_space<vmem>>, %arg2: memref<7x128x128xbf16, #tpu.memory_space<vmem>>, %arg3: memref<7x1x128xf32, #tpu.memory_space<vmem>>, %arg4: memref<64x128xf32, #tpu.memory_space<vmem>>, %arg5: memref<64x128xbf16, #tpu.memory_space<vmem>>) attributes {dimension_semantics = [#tpu.dimension_semantics<parallel>], iteration_bounds = array<i64: 1>, scalar_prefetch = 0 : i64, scratch_operands = 1 : i64, tpu.core_type = #tpu.core_type<tc>, window_params = [{transform_indices = @transform_0, window_bounds = array<i64: 64, 8>}, {pipeline_mode = #tpu.pipeline_mode<synchronous>, transform_indices = @transform_1, window_bounds = array<i64: 7, 128, 128>}, {pipeline_mode = #tpu.pipeline_mode<synchronous>, transform_indices = @transform_2, window_bounds = array<i64: 7, 1, 128>}, {transform_indices = @transform_3, window_bounds = array<i64: 64, 128>}]} {
    %c0 = arith.constant 0 : index
    %c0_0 = arith.constant 0 : index
    %c0_1 = arith.constant 0 : index
    %0 = vector.load %arg2[%c0, %c0_0, %c0_1] : memref<7x128x128xbf16, #tpu.memory_space<vmem>>, vector<1x8x128xbf16>
    %1 = vector.shape_cast %0 : vector<1x8x128xbf16> to vector<8x128xbf16>
    %2 = arith.extf %1 : vector<8x128xbf16> to vector<8x128xf32>
    %c0_2 = arith.constant 0 : index
    %c0_3 = arith.constant 0 : index
    %c0_4 = arith.constant 0 : index
    %3 = vector.load %arg3[%c0_2, %c0_3, %c0_4] : memref<7x1x128xf32, #tpu.memory_space<vmem>>, vector<1x1x128xf32>
    %4 = vector.shape_cast %3 : vector<1x1x128xf32> to vector<1x128xf32>
    %c0_5 = arith.constant 0 : index
    %c0_6 = arith.constant 0 : index
    %5 = vector.load %arg1[%c0_5, %c0_6] : memref<64x8xbf16, #tpu.memory_space<vmem>>, vector<64x8xbf16>
    %6 = arith.extf %5 : vector<64x8xbf16> to vector<64x8xf32>
    %7 = vector.extract_strided_slice %6 {offsets = [0, 0], sizes = [64, 1], strides = [1, 1]} : vector<64x8xf32> to vector<64x1xf32>
    %8 = vector.extract_strided_slice %2 {offsets = [0, 0], sizes = [1, 128], strides = [1, 1]} : vector<8x128xf32> to vector<1x128xf32>
    %9 = vector.broadcast %7 : vector<64x1xf32> to vector<64x128xf32>
    %10 = vector.broadcast %8 : vector<1x128xf32> to vector<64x128xf32>
    %11 = arith.mulf %9, %10 : vector<64x128xf32>
    %12 = vector.extract_strided_slice %6 {offsets = [0, 1], sizes = [64, 1], strides = [1, 1]} : vector<64x8xf32> to vector<64x1xf32>
    %13 = vector.extract_strided_slice %2 {offsets = [1, 0], sizes = [1, 128], strides = [1, 1]} : vector<8x128xf32> to vector<1x128xf32>
    %14 = vector.broadcast %12 : vector<64x1xf32> to vector<64x128xf32>
    %15 = vector.broadcast %13 : vector<1x128xf32> to vector<64x128xf32>
    %16 = arith.mulf %14, %15 : vector<64x128xf32>
    %17 = arith.addf %11, %16 : vector<64x128xf32>
    %18 = vector.extract_strided_slice %6 {offsets = [0, 2], sizes = [64, 1], strides = [1, 1]} : vector<64x8xf32> to vector<64x1xf32>
    %19 = vector.extract_strided_slice %2 {offsets = [2, 0], sizes = [1, 128], strides = [1, 1]} : vector<8x128xf32> to vector<1x128xf32>
    %20 = vector.broadcast %18 : vector<64x1xf32> to vector<64x128xf32>
    %21 = vector.broadcast %19 : vector<1x128xf32> to vector<64x128xf32>
    %22 = arith.mulf %20, %21 : vector<64x128xf32>
    %23 = arith.addf %17, %22 : vector<64x128xf32>
    %24 = vector.extract_strided_slice %6 {offsets = [0, 3], sizes = [64, 1], strides = [1, 1]} : vector<64x8xf32> to vector<64x1xf32>
    %25 = vector.extract_strided_slice %2 {offsets = [3, 0], sizes = [1, 128], strides = [1, 1]} : vector<8x128xf32> to vector<1x128xf32>
    %26 = vector.broadcast %24 : vector<64x1xf32> to vector<64x128xf32>
    %27 = vector.broadcast %25 : vector<1x128xf32> to vector<64x128xf32>
    %28 = arith.mulf %26, %27 : vector<64x128xf32>
    %29 = arith.addf %23, %28 : vector<64x128xf32>
    %30 = vector.broadcast %4 : vector<1x128xf32> to vector<64x128xf32>
    %31 = arith.addf %29, %30 : vector<64x128xf32>
    %32 = arith.truncf %31 : vector<64x128xf32> to vector<64x128xbf16>
    %33 = math.tanh %32 : vector<64x128xbf16>
    %c0_7 = arith.constant 0 : index
    %c0_8 = arith.constant 0 : index
    %34 = vector.load %arg5[%c0_7, %c0_8] : memref<64x128xbf16, #tpu.memory_space<vmem>>, vector<64x128xbf16>
    tpu.vector_store %arg5[%c0_7, %c0_8], %33 {strides = array<i32>} : memref<64x128xbf16, #tpu.memory_space<vmem>>, vector<64x128xbf16>,
    %c1 = arith.constant 1 : index
    %c0_9 = arith.constant 0 : index
    %c0_10 = arith.constant 0 : index
    %35 = vector.load %arg2[%c1, %c0_9, %c0_10] : memref<7x128x128xbf16, #tpu.memory_space<vmem>>, vector<1x128x128xbf16>
    %36 = vector.shape_cast %35 : vector<1x128x128xbf16> to vector<128x128xbf16>
    %c1_11 = arith.constant 1 : index
    %c0_12 = arith.constant 0 : index
    %c0_13 = arith.constant 0 : index
    %37 = vector.load %arg3[%c1_11, %c0_12, %c0_13] : memref<7x1x128xf32, #tpu.memory_space<vmem>>, vector<1x1x128xf32>
    %38 = vector.shape_cast %37 : vector<1x1x128xf32> to vector<1x128xf32>
    %c0_14 = arith.constant 0 : index
    %c0_15 = arith.constant 0 : index
    %39 = vector.load %arg5[%c0_14, %c0_15] : memref<64x128xbf16, #tpu.memory_space<vmem>>, vector<64x128xbf16>
    %cst = arith.constant dense<0.000000e+00> : vector<64x128xf32>
    %40 = tpu.matmul %39, %36, %cst {dimension_numbers = #tpu.dot_dimension_numbers<[1], [0], [0], [1], [0, 0, 1, 1], [], []>} : vector<64x128xbf16>, vector<128x128xbf16>, vector<64x128xf32> -> vector<64x128xf32>
    %41 = vector.broadcast %38 : vector<1x128xf32> to vector<64x128xf32>
    %42 = arith.addf %40, %41 : vector<64x128xf32>
    %43 = arith.truncf %42 : vector<64x128xf32> to vector<64x128xbf16>
    %44 = math.tanh %43 : vector<64x128xbf16>
    %c0_16 = arith.constant 0 : index
    %c0_17 = arith.constant 0 : index
    %45 = vector.load %arg5[%c0_16, %c0_17] : memref<64x128xbf16, #tpu.memory_space<vmem>>, vector<64x128xbf16>
    tpu.vector_store %arg5[%c0_16, %c0_17], %44 {strides = array<i32>} : memref<64x128xbf16, #tpu.memory_space<vmem>>, vector<64x128xbf16>,
    %c2 = arith.constant 2 : index
    %c0_18 = arith.constant 0 : index
    %c0_19 = arith.constant 0 : index
    %46 = vector.load %arg2[%c2, %c0_18, %c0_19] : memref<7x128x128xbf16, #tpu.memory_space<vmem>>, vector<1x128x128xbf16>
    %47 = vector.shape_cast %46 : vector<1x128x128xbf16> to vector<128x128xbf16>
    %c2_20 = arith.constant 2 : index
    %c0_21 = arith.constant 0 : index
    %c0_22 = arith.constant 0 : index
    %48 = vector.load %arg3[%c2_20, %c0_21, %c0_22] : memref<7x1x128xf32, #tpu.memory_space<vmem>>, vector<1x1x128xf32>
    %49 = vector.shape_cast %48 : vector<1x1x128xf32> to vector<1x128xf32>
    %c0_23 = arith.constant 0 : index
    %c0_24 = arith.constant 0 : index
    %50 = vector.load %arg5[%c0_23, %c0_24] : memref<64x128xbf16, #tpu.memory_space<vmem>>, vector<64x128xbf16>
    %cst_25 = arith.constant dense<0.000000e+00> : vector<64x128xf32>
    %51 = tpu.matmul %50, %47, %cst_25 {dimension_numbers = #tpu.dot_dimension_numbers<[1], [0], [0], [1], [0, 0, 1, 1], [], []>} : vector<64x128xbf16>, vector<128x128xbf16>, vector<64x128xf32> -> vector<64x128xf32>
    %52 = vector.broadcast %49 : vector<1x128xf32> to vector<64x128xf32>
    %53 = arith.addf %51, %52 : vector<64x128xf32>
    %54 = arith.truncf %53 : vector<64x128xf32> to vector<64x128xbf16>
    %55 = math.tanh %54 : vector<64x128xbf16>
    %c0_26 = arith.constant 0 : index
    %c0_27 = arith.constant 0 : index
    %56 = vector.load %arg5[%c0_26, %c0_27] : memref<64x128xbf16, #tpu.memory_space<vmem>>, vector<64x128xbf16>
    tpu.vector_store %arg5[%c0_26, %c0_27], %55 {strides = array<i32>} : memref<64x128xbf16, #tpu.memory_space<vmem>>, vector<64x128xbf16>,
    %c3 = arith.constant 3 : index
    %c0_28 = arith.constant 0 : index
    %c0_29 = arith.constant 0 : index
    %57 = vector.load %arg2[%c3, %c0_28, %c0_29] : memref<7x128x128xbf16, #tpu.memory_space<vmem>>, vector<1x128x128xbf16>
    %58 = vector.shape_cast %57 : vector<1x128x128xbf16> to vector<128x128xbf16>
    %c3_30 = arith.constant 3 : index
    %c0_31 = arith.constant 0 : index
    %c0_32 = arith.constant 0 : index
    %59 = vector.load %arg3[%c3_30, %c0_31, %c0_32] : memref<7x1x128xf32, #tpu.memory_space<vmem>>, vector<1x1x128xf32>
    %60 = vector.shape_cast %59 : vector<1x1x128xf32> to vector<1x128xf32>
    %c0_33 = arith.constant 0 : index
    %c0_34 = arith.constant 0 : index
    %61 = vector.load %arg5[%c0_33, %c0_34] : memref<64x128xbf16, #tpu.memory_space<vmem>>, vector<64x128xbf16>
    %cst_35 = arith.constant dense<0.000000e+00> : vector<64x128xf32>
    %62 = tpu.matmul %61, %58, %cst_35 {dimension_numbers = #tpu.dot_dimension_numbers<[1], [0], [0], [1], [0, 0, 1, 1], [], []>} : vector<64x128xbf16>, vector<128x128xbf16>, vector<64x128xf32> -> vector<64x128xf32>
    %63 = vector.broadcast %60 : vector<1x128xf32> to vector<64x128xf32>
    %64 = arith.addf %62, %63 : vector<64x128xf32>
    %65 = arith.truncf %64 : vector<64x128xf32> to vector<64x128xbf16>
    %66 = math.tanh %65 : vector<64x128xbf16>
    %c0_36 = arith.constant 0 : index
    %c0_37 = arith.constant 0 : index
    %67 = vector.load %arg5[%c0_36, %c0_37] : memref<64x128xbf16, #tpu.memory_space<vmem>>, vector<64x128xbf16>
    tpu.vector_store %arg5[%c0_36, %c0_37], %66 {strides = array<i32>} : memref<64x128xbf16, #tpu.memory_space<vmem>>, vector<64x128xbf16>,
    %c4 = arith.constant 4 : index
    %c0_38 = arith.constant 0 : index
    %c0_39 = arith.constant 0 : index
    %68 = vector.load %arg2[%c4, %c0_38, %c0_39] : memref<7x128x128xbf16, #tpu.memory_space<vmem>>, vector<1x128x128xbf16>
    %69 = vector.shape_cast %68 : vector<1x128x128xbf16> to vector<128x128xbf16>
    %c4_40 = arith.constant 4 : index
    %c0_41 = arith.constant 0 : index
    %c0_42 = arith.constant 0 : index
    %70 = vector.load %arg3[%c4_40, %c0_41, %c0_42] : memref<7x1x128xf32, #tpu.memory_space<vmem>>, vector<1x1x128xf32>
    %71 = vector.shape_cast %70 : vector<1x1x128xf32> to vector<1x128xf32>
    %c0_43 = arith.constant 0 : index
    %c0_44 = arith.constant 0 : index
    %72 = vector.load %arg5[%c0_43, %c0_44] : memref<64x128xbf16, #tpu.memory_space<vmem>>, vector<64x128xbf16>
    %cst_45 = arith.constant dense<0.000000e+00> : vector<64x128xf32>
    %73 = tpu.matmul %72, %69, %cst_45 {dimension_numbers = #tpu.dot_dimension_numbers<[1], [0], [0], [1], [0, 0, 1, 1], [], []>} : vector<64x128xbf16>, vector<128x128xbf16>, vector<64x128xf32> -> vector<64x128xf32>
    %74 = vector.broadcast %71 : vector<1x128xf32> to vector<64x128xf32>
    %75 = arith.addf %73, %74 : vector<64x128xf32>
    %76 = arith.truncf %75 : vector<64x128xf32> to vector<64x128xbf16>
    %77 = math.tanh %76 : vector<64x128xbf16>
    %c0_46 = arith.constant 0 : index
    %c0_47 = arith.constant 0 : index
    %78 = vector.load %arg5[%c0_46, %c0_47] : memref<64x128xbf16, #tpu.memory_space<vmem>>, vector<64x128xbf16>
    tpu.vector_store %arg5[%c0_46, %c0_47], %77 {strides = array<i32>} : memref<64x128xbf16, #tpu.memory_space<vmem>>, vector<64x128xbf16>,
    %c5 = arith.constant 5 : index
    %c0_48 = arith.constant 0 : index
    %c0_49 = arith.constant 0 : index
    %79 = vector.load %arg2[%c5, %c0_48, %c0_49] : memref<7x128x128xbf16, #tpu.memory_space<vmem>>, vector<1x128x128xbf16>
    %80 = vector.shape_cast %79 : vector<1x128x128xbf16> to vector<128x128xbf16>
    %c5_50 = arith.constant 5 : index
    %c0_51 = arith.constant 0 : index
    %c0_52 = arith.constant 0 : index
    %81 = vector.load %arg3[%c5_50, %c0_51, %c0_52] : memref<7x1x128xf32, #tpu.memory_space<vmem>>, vector<1x1x128xf32>
    %82 = vector.shape_cast %81 : vector<1x1x128xf32> to vector<1x128xf32>
    %c0_53 = arith.constant 0 : index
    %c0_54 = arith.constant 0 : index
    %83 = vector.load %arg5[%c0_53, %c0_54] : memref<64x128xbf16, #tpu.memory_space<vmem>>, vector<64x128xbf16>
    %cst_55 = arith.constant dense<0.000000e+00> : vector<64x128xf32>
    %84 = tpu.matmul %83, %80, %cst_55 {dimension_numbers = #tpu.dot_dimension_numbers<[1], [0], [0], [1], [0, 0, 1, 1], [], []>} : vector<64x128xbf16>, vector<128x128xbf16>, vector<64x128xf32> -> vector<64x128xf32>
    %85 = vector.broadcast %82 : vector<1x128xf32> to vector<64x128xf32>
    %86 = arith.addf %84, %85 : vector<64x128xf32>
    %87 = arith.truncf %86 : vector<64x128xf32> to vector<64x128xbf16>
    %88 = math.tanh %87 : vector<64x128xbf16>
    %c0_56 = arith.constant 0 : index
    %c0_57 = arith.constant 0 : index
    %89 = vector.load %arg5[%c0_56, %c0_57] : memref<64x128xbf16, #tpu.memory_space<vmem>>, vector<64x128xbf16>
    tpu.vector_store %arg5[%c0_56, %c0_57], %88 {strides = array<i32>} : memref<64x128xbf16, #tpu.memory_space<vmem>>, vector<64x128xbf16>,
    %c6 = arith.constant 6 : index
    %c0_58 = arith.constant 0 : index
    %c0_59 = arith.constant 0 : index
    %90 = vector.load %arg2[%c6, %c0_58, %c0_59] : memref<7x128x128xbf16, #tpu.memory_space<vmem>>, vector<1x128x128xbf16>
    %91 = vector.shape_cast %90 : vector<1x128x128xbf16> to vector<128x128xbf16>
    %c6_60 = arith.constant 6 : index
    %c0_61 = arith.constant 0 : index
    %c0_62 = arith.constant 0 : index
    %92 = vector.load %arg3[%c6_60, %c0_61, %c0_62] : memref<7x1x128xf32, #tpu.memory_space<vmem>>, vector<1x1x128xf32>
    %93 = vector.shape_cast %92 : vector<1x1x128xf32> to vector<1x128xf32>
    %c0_63 = arith.constant 0 : index
    %c0_64 = arith.constant 0 : index
    %94 = vector.load %arg5[%c0_63, %c0_64] : memref<64x128xbf16, #tpu.memory_space<vmem>>, vector<64x128xbf16>
    %cst_65 = arith.constant dense<0.000000e+00> : vector<64x128xf32>
    %95 = tpu.matmul %94, %91, %cst_65 {dimension_numbers = #tpu.dot_dimension_numbers<[1], [0], [0], [1], [0, 0, 1, 1], [], []>} : vector<64x128xbf16>, vector<128x128xbf16>, vector<64x128xf32> -> vector<64x128xf32>
    %96 = vector.broadcast %93 : vector<1x128xf32> to vector<64x128xf32>
    %97 = arith.addf %95, %96 : vector<64x128xf32>
    %c0_66 = arith.constant 0 : index
    %c0_67 = arith.constant 0 : index
    %98 = vector.load %arg4[%c0_66, %c0_67] : memref<64x128xf32, #tpu.memory_space<vmem>>, vector<64x128xf32>
    tpu.vector_store %arg4[%c0_66, %c0_67], %97 {strides = array<i32>} : memref<64x128xf32, #tpu.memory_space<vmem>>, vector<64x128xf32>,
    return
  }
  func.func @transform_0(%arg0: i32) -> (i32, i32) {
    %c0_i32 = arith.constant 0 : i32
    %c0_i32_0 = arith.constant 0 : i32
    return %arg0, %c0_i32 : i32, i32
  }
  func.func @transform_1(%arg0: i32) -> (i32, i32, i32) {
    %c0_i32 = arith.constant 0 : i32
    %c0_i32_0 = arith.constant 0 : i32
    %c0_i32_1 = arith.constant 0 : i32
    %c0_i32_2 = arith.constant 0 : i32
    return %c0_i32, %c0_i32_0, %c0_i32_1 : i32, i32, i32
  }
  func.func @transform_2(%arg0: i32) -> (i32, i32, i32) {
    %c0_i32 = arith.constant 0 : i32
    %c0_i32_0 = arith.constant 0 : i32
    %c0_i32_1 = arith.constant 0 : i32
    %c0_i32_2 = arith.constant 0 : i32
    return %c0_i32, %c0_i32_0, %c0_i32_1 : i32, i32, i32
  }
  func.func @transform_3(%arg0: i32) -> (i32, i32) {
    %c0_i32 = arith.constant 0 : i32
    %c0_i32_0 = arith.constant 0 : i32
    return %arg0, %c0_i32 : i32, i32
  }
}

</mosaic_0001>

<bundles_post_ra>
// kernel: tpu_custom_call.1
= control target key start
LH: loop header
LB: loop body
LE: loop exit
PB: predicated region body
PF: predicated region fallthrough
CT: control target
= control target key end

     0   :  { %8 = vsyncpa [#allocation4], 0  ;;  %s1904_s0 = inlined_call_operand.vmem [shape: bf16[64,8], index: 0, kind: input, shape index: {}]   ;;  %s1905_s1 = inlined_call_operand.hbm [shape: bf16[7,128,128], index: 1, kind: input, shape index: {}]   ;;  %s1906_s2 = inlined_call_operand.vmem [shape: f32[7,1,128], index: 2, kind: input, shape index: {}]   ;;  %s1907_s3 = inlined_call_operand.hbm [shape: f32[64,128], index: 3, kind: output, shape index: {}]  }
   0x1   :  { %9 = vsyncpa [#allocation5], 0  ;;  %s1763_s12 = smov [#allocation3]   ;;  %s1715_s16 = scalar_lea.hbm %s1905_s1, 7168 }
   0x2   :  { %s17_s13 = sshll.u32 %s1763_s12, 4  ;;  %p1716_p0 = scmp.ne.s32.totalorder %s1905_s1, %s1715_s16  ;;  %s18_s13 = int_to_ptr.vmem [resolvable:$true] %s17_s13 }
   0x3   :  { %p1719_p1 = scmp.lt.u32.totalorder %s1715_s16, %s1905_s1 }
   0x5   :  { %p1721_p2 = pnand %p1719_p1, %p1716_p0 }
   0x7   :  { %1724 = shalt.err (!%p1721_p2)
}
   0x8   :  { %s1725_s21 = scalar_lea.vmem %s18_s13, 7168  ;;  %p1730_p4 = scmp.lt.s32.totalorder %s18_s13, %s18_s13 }
   0x9   :  { %p1726_p3 = scmp.ne.s32.totalorder %s18_s13, %s1725_s21  ;;  %p1731_p5 = scmp.lt.s32.totalorder %s1725_s21, %s1725_s21 }
   0xb   :  { %p1732_p6 = por %p1731_p5, %p1730_p4 }
   0xd   :  { %p1733_p7 = pnand %p1732_p6, %p1726_p3 }
   0xf   :  { %1736 = shalt.err (!%p1733_p7)
}
  0x10   :  { %s1764_s22 = smov 64   ;;  %s1765_s23 = smov 4  }
  0x11   :  { %23 = dma.hbm_to_vmem [thread:$0]  %s1905_s1, 7168, %s18_s13, [#allocation4], %s1764_s22, %s1764_s22, %s1765_s23  }
  0x12   :  { %1759 = dma.done.wait [#allocation4], 7168  }
  0x13   :  { %1760 = vsyncadd [#allocation4], 4294960128  ;;  %v1766_v0 = vmov 0   ;;  %v1297_v1 = vld [vmem:[%s1904_s0 + $0x8] sm:$0xff]   ;;  %v1282_v2 = vld [vmem:[%s1904_s0] sm:$0xff]   ;;  %v1767_v12 = vmov 1   ;;  %v89_v31 = vlaneseq }
  0x14   :  { %1532 = vset.pattern.permute.xlu1 %v1766_v0  ;;  %1526 = vset.pattern.permute.xlu0 %v1766_v0  ;;  %v1287_v3 = vunpack.c.l.bf16 %v1297_v1  ;;  %v1288_v4 = vunpack.c.h.bf16 %v1297_v1  ;;  %v1283_v5 = vunpack.c.l.bf16 %v1282_v2  ;;  %v1284_v6 = vunpack.c.h.bf16 %v1282_v2  ;;  %v1298_v7 = vld [vmem:[%s1904_s0 + $0x10] sm:$0xff]   ;;  %v1299_v15 = vld [vmem:[%s1904_s0 + $0x18] sm:$0xff]   ;;  %v1619_v16 = vld [vmem:[#allocation3 + $0x40] sm:$0xff]   ;;  %s1770_s19 = smov [#allocation6]  }
  0x15   :  { %v1291_v10 = vunpack.c.l.bf16 %v1298_v7  ;;  %v1292_v11 = vunpack.c.h.bf16 %v1298_v7  ;;  %v1768_v13 = vmov 2   ;;  %v1295_v17 = vunpack.c.l.bf16 %v1299_v15  ;;  %1372 = vmatprep.subr.bf16.mxu0 %v1619_v16  ;;  %v1620_v19 = vld [vmem:[#allocation3 + $0x48] sm:$0xff]   ;;  %v1621_v22 = vld [vmem:[#allocation3 + $0x50] sm:$0xff]   ;;  %v1622_v23 = vld [vmem:[#allocation3 + $0x58] sm:$0xff]   ;;  %s1208_s20 = sshll.u32 %s1770_s19, 4  ;;  %s1209_s20 = int_to_ptr.vmem [resolvable:$true] %s1208_s20 }
  0x16   :  { %v1533_v8 = vpack.i.bf16 %v1288_v4, %v1287_v3  ;;  %v1527_v9 = vpack.i.bf16 %v1284_v6, %v1283_v5  ;;  %v1296_v18 = vunpack.c.h.bf16 %v1299_v15  ;;  %1373 = vmatpush3.bf16.msra.mxu0 %v1619_v16  ;;  %v1769_v20 = vmov 3   ;;  %v1623_v24 = vld [vmem:[#allocation3 + $0x60] sm:$0xff]   ;;  %v1624_v25 = vld [vmem:[#allocation3 + $0x68] sm:$0xff]   ;;  %v1625_v26 = vld [vmem:[#allocation3 + $0x70] sm:$0xff]   ;;  %p1742_p9 = scmp.lt.s32.totalorder %s1209_s20, %s1209_s20 }
  0x17   :  { %v1568_v14 = vpack.i.bf16 %v1292_v11, %v1291_v10  ;;  %1374 = vmatprep.subr.bf16.mxu0 %v1620_v19  ;;  %v1626_v27 = vld [vmem:[#allocation3 + $0x78] sm:$0xff]   ;;  %v1627_v28 = vld [vmem:[#allocation3 + $0x80] sm:$0xff]   ;;  %v1628_v29 = vld [vmem:[#allocation3 + $0x88] sm:$0xff]   ;;  %v90_v34 = vshrl.u32 %v89_v31, 7 }
  0x18   :  { %1534 = vperm.xlu1 %1532, %v1533_v8   ;;  %1528 = vperm.xlu0 %1526, %v1527_v9   ;;  %v1591_v21 = vpack.i.bf16 %v1296_v18, %v1295_v17  ;;  %v1629_v30 = vld [vmem:[#allocation3 + $0x90] sm:$0xff]   ;;  %v30_v35 = vld [vmem:[#allocation3] sm:$0xf] }
  0x19   :  { %1396 = vmatprep.subr.bf16.mxu1 %v1627_v28  ;;  %v135_v36 = vsub.s32 1, %v90_v34  ;;  %v91_v39 = vsub.s32 0, %v90_v34  ;;  %v31_v40 = vunpack.c.l.bf16 %v30_v35  ;;  %v187_v41 = vsub.s32 2, %v90_v34 }
  0x1a   :  { %1375 = vmatpush3.bf16.msra.mxu0 %v1620_v19  ;;  %1397 = vmatpush3.bf16.msra.mxu1 %v1627_v28  ;;  %v239_v50 = vsub.s32 3, %v90_v34  ;;  %v1846_v28 = vld [vmem:[%s1906_s2] ss:$0 sm:$0xff] }
  0x1b   :  { %1376 = vmatprep.subr.bf16.mxu0 %v1621_v22  ;;  %1398 = vmatprep.subr.bf16.mxu1 %v1628_v29  ;;  %v1817_v44 = vrot.slane %v31_v40, %v135_v36  ;;  %v1819_v47 = vrot.slane %v31_v40, %v91_v39  ;;  %v1823_v55 = vrot.slane %v31_v40, %v187_v41 }
  0x1c   :  { %1538 = vset.pattern.permute.xlu1 %v1767_v12  ;;  %1550 = vset.pattern.permute.xlu0 %v1768_v13  ;;  %v1829_v60 = vrot.slane %v31_v40, %v239_v50 }
  0x1d   :  { %1540 = vperm.xlu1 %1538, %v1533_v8   ;;  %1552 = vperm.xlu0 %1550, %v1533_v8  }
  0x1e   :  { %1377 = vmatpush3.bf16.msra.mxu0 %v1621_v22  ;;  %1399 = vmatpush3.bf16.msra.mxu1 %v1628_v29 }
  0x1f   :  { %1378 = vmatprep.subr.bf16.mxu0 %v1622_v23  ;;  %1400 = vmatprep.subr.bf16.mxu1 %v1629_v30 }
  0x21   :  { %1544 = vset.pattern.permute.xlu1 %v1768_v13  ;;  %1567 = vset.pattern.permute.xlu0 %v1766_v0 }
  0x22   :  { %1546 = vperm.xlu1 %1544, %v1527_v9   ;;  %1569 = vperm.xlu0 %1567, %v1568_v14  }
  0x23   :  { %1379 = vmatpush3.bf16.msra.mxu0 %v1622_v23  ;;  %1401 = vmatpush3.bf16.msra.mxu1 %v1629_v30 }
  0x24   :  { %1380 = vmatprep.subr.bf16.mxu0 %v1623_v24 }
  0x26   :  { %1556 = vset.pattern.permute.xlu1 %v1769_v20  ;;  %1573 = vset.pattern.permute.xlu0 %v1767_v12 }
  0x27   :  { %1558 = vperm.xlu1 %1556, %v1527_v9   ;;  %1575 = vperm.xlu0 %1573, %v1527_v9  }
  0x28   :  { %1381 = vmatpush3.bf16.msra.mxu0 %v1623_v24 }
  0x29   :  { %1382 = vmatprep.subr.bf16.mxu0 %v1624_v25 }
  0x2b   :  { %1563 = vperm.xlu1 %1556, %v1533_v8   ;;  %1592 = vperm.xlu0 %1573, %v1591_v21  }
  0x2c   :  { %1383 = vmatpush3.bf16.msra.mxu0 %v1624_v25 }
  0x2d   :  { %1384 = vmatprep.subr.bf16.mxu0 %v1625_v26 }
  0x2f   :  { %1579 = vset.pattern.permute.xlu1 %v1767_v12  ;;  %1607 = vset.pattern.permute.xlu0 %v1769_v20 }
  0x30   :  { %1581 = vperm.xlu1 %1579, %v1568_v14   ;;  %1609 = vperm.xlu0 %1607, %v1568_v14  }
  0x31   :  { %1385 = vmatpush3.bf16.msra.mxu0 %v1625_v26 }
  0x32   :  { %1386 = vmatprep.subr.bf16.mxu0 %v1626_v27 }
  0x34   :  { %1585 = vset.pattern.permute.xlu1 %v1766_v0 }
  0x35   :  { %1587 = vperm.xlu1 %1585, %v1591_v21   ;;  %1387 = vmatpush3.bf16.msra.mxu0 %v1626_v27 }
  0x39   :  { %1596 = vset.pattern.permute.xlu1 %v1768_v13 }
  0x3a   :  { %1598 = vperm.xlu1 %1596, %v1568_v14  }
  0x3e   :  { %1603 = vperm.xlu1 %1596, %v1591_v21  }
  0x42   :  { %1613 = vset.pattern.permute.xlu1 %v1769_v20 }
  0x43   :  { %1615 = vperm.xlu1 %1613, %v1591_v21  }
  0x97   :  { %v1535_v32 = vpop.permute.xlu1 %1534  ;;  %v1529_v33 = vpop.permute.xlu0 %1528 }
  0x98   :  { %v1537_v45 = vunpack.i.h.bf16 %v1535_v32  ;;  %v1536_v46 = vunpack.i.l.bf16 %v1535_v32  ;;  %v1531_v51 = vunpack.i.h.bf16 %v1529_v33  ;;  %v1530_v52 = vunpack.i.l.bf16 %v1529_v33 }
  0x9a   :  { %v95_v58 = vmul.f32 %v1536_v46, %v1819_v47  ;;  %v96_v59 = vmul.f32 %v1537_v45, %v1819_v47  ;;  %v93_v61 = vmul.f32 %v1530_v52, %v1819_v47  ;;  %v94_v62 = vmul.f32 %v1531_v51, %v1819_v47 }
  0x9c   :  { %v1541_v37 = vpop.permute.xlu1 %1540  ;;  %v1553_v38 = vpop.permute.xlu0 %1552 }
  0x9d   :  { %v1543_v42 = vunpack.i.h.bf16 %v1541_v37  ;;  %v1542_v43 = vunpack.i.l.bf16 %v1541_v37  ;;  %v1555_v53 = vunpack.i.h.bf16 %v1553_v38  ;;  %v1554_v54 = vunpack.i.l.bf16 %v1553_v38 }
  0x9f   :  { %v139_v56 = vmul.f32 %v1542_v43, %v1817_v44  ;;  %v140_v57 = vmul.f32 %v1543_v42, %v1817_v44  ;;  %v191_v3 = vmul.f32 %v1554_v54, %v1823_v55  ;;  %v192_v4 = vmul.f32 %v1555_v53, %v1823_v55 }
  0xa1   :  { %v1547_v48 = vpop.permute.xlu1 %1546  ;;  %v1821_v49 = vpop.permute.xlu0 %1569  ;;  %v147_v7 = vadd.f32 %v139_v56, %v95_v58  ;;  %v148_v8 = vadd.f32 %v140_v57, %v96_v59 }
  0xa2   :  { %v1549_v63 = vunpack.i.h.bf16 %v1547_v48  ;;  %v1548_v0 = vunpack.i.l.bf16 %v1547_v48  ;;  %v1572_v41 = vunpack.i.h.bf16 %v1821_v49  ;;  %v1571_v42 = vunpack.i.l.bf16 %v1821_v49 }
  0xa3   :  { %v199_v20 = vadd.f32 %v191_v3, %v147_v7  ;;  %v200_v21 = vadd.f32 %v192_v4, %v148_v8 }
  0xa4   :  { %v189_v13 = vmul.f32 %v1548_v0, %v1823_v55  ;;  %v190_v14 = vmul.f32 %v1549_v63, %v1823_v55  ;;  %v97_v52 = vmul.f32 %v1571_v42, %v1819_v47  ;;  %v98_v53 = vmul.f32 %v1572_v41, %v1819_v47  ;;  %v1634_v41 = vld [vmem:[#allocation3 + $0xb8] sm:$0xff]   ;;  %v1636_v42 = vld [vmem:[#allocation3 + $0xc8] sm:$0xff]  }
  0xa6   :  { %v1559_v1 = vpop.permute.xlu1 %1558  ;;  %v1576_v2 = vpop.permute.xlu0 %1575 }
  0xa7   :  { %v1578_v5 = vunpack.i.h.bf16 %v1576_v2  ;;  %v1577_v6 = vunpack.i.l.bf16 %v1576_v2  ;;  %v1561_v9 = vunpack.i.h.bf16 %v1559_v1  ;;  %v1560_v10 = vunpack.i.l.bf16 %v1559_v1 }
  0xa9   :  { %v137_v11 = vmul.f32 %v1577_v6, %v1817_v44  ;;  %v138_v12 = vmul.f32 %v1578_v5, %v1817_v44  ;;  %v241_v22 = vmul.f32 %v1560_v10, %v1829_v60  ;;  %v242_v23 = vmul.f32 %v1561_v9, %v1829_v60 }
  0xaa   :  { %v1564_v15 = vpop.permute.xlu1 %1563  ;;  %v1593_v34 = vpop.permute.xlu0 %1592 }
  0xab   :  { %v145_v16 = vadd.f32 %v137_v11, %v93_v61  ;;  %v146_v17 = vadd.f32 %v138_v12, %v94_v62  ;;  %v1566_v18 = vunpack.i.h.bf16 %v1564_v15  ;;  %v1565_v19 = vunpack.i.l.bf16 %v1564_v15 }
  0xac   :  { %v1595_v58 = vunpack.i.h.bf16 %v1593_v34  ;;  %v1594_v59 = vunpack.i.l.bf16 %v1593_v34 }
  0xad   :  { %v197_v24 = vadd.f32 %v189_v13, %v145_v16  ;;  %v198_v25 = vadd.f32 %v190_v14, %v146_v17  ;;  %v243_v26 = vmul.f32 %v1565_v19, %v1829_v60  ;;  %v244_v27 = vmul.f32 %v1566_v18, %v1829_v60 }
  0xae   :  { %v143_v13 = vmul.f32 %v1594_v59, %v1817_v44  ;;  %v144_v14 = vmul.f32 %v1595_v58, %v1817_v44 }
  0xaf   :  { %v251_v29 = vadd.f32 %v243_v26, %v199_v20  ;;  %v252_v30 = vadd.f32 %v244_v27, %v200_v21  ;;  %v1582_v31 = vpop.permute.xlu1 %1581  ;;  %v249_v32 = vadd.f32 %v241_v22, %v197_v24  ;;  %v250_v33 = vadd.f32 %v242_v23, %v198_v25  ;;  %v1610_v48 = vpop.permute.xlu0 %1609 }
  0xb0   :  { %v1584_v43 = vunpack.i.h.bf16 %v1582_v31  ;;  %v1583_v45 = vunpack.i.l.bf16 %v1582_v31  ;;  %v1612_v50 = vunpack.i.h.bf16 %v1610_v48  ;;  %v1611_v51 = vunpack.i.l.bf16 %v1610_v48 }
  0xb1   :  { %v265_v35 = vadd.f32 %v1846_v28, %v251_v29  ;;  %v266_v36 = vadd.f32 %v1846_v28, %v252_v30  ;;  %v263_v37 = vadd.f32 %v1846_v28, %v249_v32  ;;  %v264_v38 = vadd.f32 %v1846_v28, %v250_v33 }
  0xb2   :  { %v141_v54 = vmul.f32 %v1583_v45, %v1817_v44  ;;  %v142_v56 = vmul.f32 %v1584_v43, %v1817_v44  ;;  %v245_v0 = vmul.f32 %v1611_v51, %v1829_v60  ;;  %v246_v1 = vmul.f32 %v1612_v50, %v1829_v60  ;;  %v1637_v43 = vld [vmem:[#allocation3 + $0xd0] sm:$0xff]  }
  0xb3   :  { %v272_v39 = vpack.c.bf16 %v266_v36, %v265_v35  ;;  %v271_v40 = vpack.c.bf16 %v264_v38, %v263_v37  ;;  %v1630_v38 = vld [vmem:[#allocation3 + $0x98] sm:$0xff]  }
  0xb4   :  { %v1588_v46 = vpop.permute.xlu1 %1587  ;;  %v149_v2 = vadd.f32 %v141_v54, %v97_v52  ;;  %v150_v3 = vadd.f32 %v142_v56, %v98_v53  ;;  %1402 = vmatprep.subr.bf16.mxu1 %v1630_v38 }
  0xb5   :  { %1667 = vtanh.bf16 %v272_v39  ;;  %v1590_v62 = vunpack.i.h.bf16 %v1588_v46  ;;  %v1589_v63 = vunpack.i.l.bf16 %v1588_v46  ;;  %1403 = vmatpush3.bf16.msra.mxu1 %v1630_v38  ;;  %v1631_v39 = vld [vmem:[#allocation3 + $0xa0] sm:$0xff]   ;;  %v1222_v46 = vld [vmem:[%s1906_s2 + $0x1] ss:$0 sm:$0xff] }
  0xb6   :  { %1669 = vtanh.bf16 %v271_v40  ;;  %1404 = vmatprep.subr.bf16.mxu1 %v1631_v39  ;;  %v1633_v40 = vld [vmem:[#allocation3 + $0xb0] sm:$0xff]  }
  0xb7   :  { %v99_v11 = vmul.f32 %v1589_v63, %v1819_v47  ;;  %v100_v12 = vmul.f32 %v1590_v62, %v1819_v47 }
  0xb9   :  { %v1599_v57 = vpop.permute.xlu1 %1598  ;;  %v151_v24 = vadd.f32 %v143_v13, %v99_v11  ;;  %v152_v47 = vadd.f32 %v144_v14, %v100_v12  ;;  %1405 = vmatpush3.bf16.msra.mxu1 %v1631_v39  ;;  %v1640_v11 = vld [vmem:[#allocation3 + $0xe8] sm:$0xff]   ;;  %v1641_v12 = vld [vmem:[#allocation3 + $0xf0] sm:$0xff]   ;;  %v1642_v13 = vld [vmem:[#allocation3 + $0xf8] sm:$0xff]  }
  0xba   :  { %v1601_v49 = vunpack.i.h.bf16 %v1599_v57  ;;  %v1600_v61 = vunpack.i.l.bf16 %v1599_v57  ;;  %v1643_v14 = vld [vmem:[#allocation3 + $0x100] sm:$0xff]  }
  0xbc   :  { %v193_v4 = vmul.f32 %v1600_v61, %v1823_v55  ;;  %v194_v5 = vmul.f32 %v1601_v49, %v1823_v55 }
  0xbd   :  { %v1604_v6 = vpop.permute.xlu1 %1603 }
  0xbe   :  { %v201_v7 = vadd.f32 %v193_v4, %v149_v2  ;;  %v202_v8 = vadd.f32 %v194_v5, %v150_v3  ;;  %v1606_v9 = vunpack.i.h.bf16 %v1604_v6  ;;  %v1605_v10 = vunpack.i.l.bf16 %v1604_v6 }
  0xc0   :  { %v1668_v15 = vpop.eup %1667  ;;  %v253_v16 = vadd.f32 %v245_v0, %v201_v7  ;;  %v254_v17 = vadd.f32 %v246_v1, %v202_v8  ;;  %v195_v19 = vmul.f32 %v1605_v10, %v1823_v55  ;;  %v196_v20 = vmul.f32 %v1606_v9, %v1823_v55  ;;  %v1638_v9 = vld [vmem:[#allocation3 + $0xd8] sm:$0xff]   ;;  %v1639_v10 = vld [vmem:[#allocation3 + $0xe0] sm:$0xff]  }
  0xc1   :  { %v1670_v18 = vpop.eup %1669 }
  0xc2   :  { %v267_v21 = vadd.f32 %v1846_v28, %v253_v16  ;;  %v268_v22 = vadd.f32 %v1846_v28, %v254_v17  ;;  %1388 = vmatprep.mubr.bf16.mxu0 %v1670_v18  ;;  %v1616_v23 = vpop.permute.xlu1 %1615  ;;  %v203_v27 = vadd.f32 %v195_v19, %v151_v24  ;;  %v204_v29 = vadd.f32 %v196_v20, %v152_v47  ;;  %v1645_v16 = vld [vmem:[#allocation3 + $0x110] sm:$0xff]   ;;  %v1232_v18 = vld [vmem:[%s1906_s2 + $0x2] ss:$0 sm:$0xff] }
  0xc3   :  { %v1618_v25 = vunpack.i.h.bf16 %v1616_v23  ;;  %v1617_v26 = vunpack.i.l.bf16 %v1616_v23  ;;  %1389 = vmatmul.mubr.bf16.vlgmr.msra.gmra.mrb[0].mxu0 %v1668_v15  ;;  %v1644_v15 = vld [vmem:[#allocation3 + $0x108] sm:$0xff]  }
  0xc4   :  { %v273_v44 = vpack.c.bf16 %v268_v22, %v267_v21 }
  0xc5   :  { %v247_v30 = vmul.f32 %v1617_v26, %v1829_v60  ;;  %v248_v31 = vmul.f32 %v1618_v25, %v1829_v60  ;;  %v1632_v60 = vld [vmem:[#allocation3 + $0xa8] sm:$0xff]  }
  0xc6   :  { %1671 = vtanh.bf16 %v273_v44  ;;  %1406 = vmatprep.subr.bf16.mxu1 %v1632_v60 }
  0xc7   :  { %v255_v55 = vadd.f32 %v247_v30, %v203_v27  ;;  %v256_v32 = vadd.f32 %v248_v31, %v204_v29  ;;  %1407 = vmatpush3.bf16.msra.mxu1 %v1632_v60  ;;  %v1646_v60 = vld [vmem:[#allocation3 + $0x118] sm:$0xff]  }
  0xc8   :  { %1408 = vmatprep.subr.bf16.mxu1 %v1633_v40 }
  0xc9   :  { %v269_v33 = vadd.f32 %v1846_v28, %v255_v55  ;;  %v270_v34 = vadd.f32 %v1846_v28, %v256_v32  ;;  %v1635_v28 = vld [vmem:[#allocation3 + $0xc0] sm:$0xff]  }
  0xca   :  { %1420 = vmatprep.subr.bf16.mxu0 %v1635_v28 }
  0xcb   :  { %v274_v35 = vpack.c.bf16 %v270_v34, %v269_v33  ;;  %1409 = vmatpush3.bf16.msra.mxu1 %v1633_v40  ;;  %1421 = vmatpush3.bf16.msra.mxu0 %v1635_v28  ;;  %v1647_v40 = vld [vmem:[#allocation3 + $0x120] sm:$0xff]   ;;  %v1649_v28 = vld [vmem:[#allocation3 + $0x130] sm:$0xff]  }
  0xcc   :  { %1410 = vmatprep.subr.bf16.mxu1 %v1634_v41  ;;  %1422 = vmatprep.subr.bf16.mxu0 %v1636_v42 }
  0xcd   :  { %1673 = vtanh.bf16 %v274_v35 }
  0xcf   :  { %1411 = vmatpush3.bf16.msra.mxu1 %v1634_v41  ;;  %1423 = vmatpush3.bf16.msra.mxu0 %v1636_v42  ;;  %v1648_v41 = vld [vmem:[#allocation3 + $0x128] sm:$0xff]   ;;  %v1650_v42 = vld [vmem:[#allocation3 + $0x138] sm:$0xff]  }
  0xd0   :  { %1424 = vmatprep.subr.bf16.mxu0 %v1637_v43  ;;  %1444 = vmatprep.subr.bf16.mxu1 %v1643_v14 }
  0xd1   :  { %v1672_v36 = vpop.eup %1671 }
  0xd2   :  { %1392 = vmatprep.mubr.bf16.mxu0 %v1672_v36 }
  0xd3   :  { %1425 = vmatpush3.bf16.msra.mxu0 %v1637_v43  ;;  %v1651_v43 = vld [vmem:[#allocation3 + $0x140] sm:$0xff]  }
  0xd4   :  { %1426 = vmatprep.subr.bf16.mxu0 %v1638_v9 }
  0xd7   :  { %1427 = vmatpush3.bf16.msra.mxu0 %v1638_v9 }
  0xd8   :  { %v1674_v37 = vpop.eup %1673  ;;  %1428 = vmatprep.subr.bf16.mxu0 %v1639_v10 }
  0xd9   :  { %1393 = vmatmul.mubr.bf16.gmra.mrb[4].mxu0 %v1674_v37 }
  0xdb   :  { %1429 = vmatpush3.bf16.msra.mxu0 %v1639_v10 }
  0xdc   :  { %1430 = vmatprep.subr.bf16.mxu0 %v1640_v11 }
  0xdf   :  { %1431 = vmatpush3.bf16.msra.mxu0 %v1640_v11  ;;  %v1654_v11 = vld [vmem:[#allocation3 + $0x158] sm:$0xff]  }
  0xe0   :  { %1432 = vmatprep.subr.bf16.mxu0 %v1641_v12 }
  0xe3   :  { %1433 = vmatpush3.bf16.msra.mxu0 %v1641_v12  ;;  %v1655_v12 = vld [vmem:[#allocation3 + $0x160] sm:$0xff]  }
  0xe4   :  { %1434 = vmatprep.subr.bf16.mxu0 %v1642_v13 }
  0xe7   :  { %1435 = vmatpush3.bf16.msra.mxu0 %v1642_v13  ;;  %v1656_v13 = vld [vmem:[#allocation3 + $0x168] sm:$0xff]  }
  0xe8   :  { %1468 = vmatprep.subr.bf16.mxu0 %v1651_v43 }
 0x196   :  { %v1390_v45 = vpop.f32.mrb[0].mxu0 }
 0x197   :  { %v394_v48 = vpop.f32.mrb[1].mxu0  ;;  %v403_v51 = vadd.f32 %v1390_v45, %v1222_v46  ;;  %v1652_v45 = vld [vmem:[#allocation3 + $0x148] sm:$0xff]  }
 0x198   :  { %v1391_v50 = vpop.f32.mrb[2].mxu0  ;;  %v395_v54 = vadd.f32 %v1222_v46, %v394_v48 }
 0x199   :  { %v406_v52 = vadd.f32 %v1391_v50, %v1222_v46  ;;  %v397_v53 = vpop.f32.mrb[3].mxu0  ;;  %v1242_v50 = vld [vmem:[%s1906_s2 + $0x3] ss:$0 sm:$0xff] }
 0x19a   :  { %v398_v56 = vadd.f32 %v1222_v46, %v397_v53 }
 0x19b   :  { %v426_v57 = vpack.c.bf16 %v406_v52, %v403_v51 }
 0x19c   :  { %v425_v58 = vpack.c.bf16 %v398_v56, %v395_v54 }
 0x19e   :  { %1675 = vtanh.bf16 %v425_v58 }
 0x19f   :  { %1677 = vtanh.bf16 %v426_v57 }
 0x1a9   :  { %v1676_v59 = vpop.eup %1675 }
 0x1aa   :  { %v1678_v49 = vpop.eup %1677  ;;  %1412 = vmatprep.mubr.bf16.mxu1 %v1676_v59 }
 0x1ab   :  { %1413 = vmatmul.mubr.bf16.vlgmr.msra.gmra.mrb[0].mxu1 %v1678_v49 }
 0x1ac   :  { %v1394_v61 = vpop.f32.mrb[4].mxu0  ;;  %1445 = vmatpush3.bf16.msra.mxu1 %v1643_v14  ;;  %v1657_v14 = vld [vmem:[#allocation3 + $0x170] sm:$0xff]  }
 0x1ad   :  { %v410_v62 = vpop.f32.mrb[5].mxu0  ;;  %v419_v0 = vadd.f32 %v1394_v61, %v1222_v46  ;;  %1446 = vmatprep.subr.bf16.mxu1 %v1644_v15 }
 0x1ae   :  { %v1395_v63 = vpop.f32.mrb[6].mxu0  ;;  %v411_v3 = vadd.f32 %v1222_v46, %v410_v62 }
 0x1af   :  { %v422_v1 = vadd.f32 %v1395_v63, %v1222_v46  ;;  %v413_v2 = vpop.f32.mrb[7].mxu0 }
 0x1b0   :  { %v414_v4 = vadd.f32 %v1222_v46, %v413_v2  ;;  %1447 = vmatpush3.bf16.msra.mxu1 %v1644_v15  ;;  %v1653_v46 = vld [vmem:[#allocation3 + $0x150] sm:$0xff]   ;;  %v1658_v15 = vld [vmem:[#allocation3 + $0x178] sm:$0xff]  }
 0x1b1   :  { %v428_v5 = vpack.c.bf16 %v422_v1, %v419_v0  ;;  %1448 = vmatprep.subr.bf16.mxu1 %v1645_v16 }
 0x1b2   :  { %v427_v6 = vpack.c.bf16 %v414_v4, %v411_v3 }
 0x1b4   :  { %1679 = vtanh.bf16 %v427_v6  ;;  %1449 = vmatpush3.bf16.msra.mxu1 %v1645_v16  ;;  %v1659_v16 = vld [vmem:[#allocation3 + $0x180] sm:$0xff]  }
 0x1b5   :  { %1681 = vtanh.bf16 %v428_v5  ;;  %1450 = vmatprep.subr.bf16.mxu1 %v1646_v60 }
 0x1b8   :  { %1451 = vmatpush3.bf16.msra.mxu1 %v1646_v60 }
 0x1b9   :  { %1452 = vmatprep.subr.bf16.mxu1 %v1647_v40 }
 0x1bc   :  { %1453 = vmatpush3.bf16.msra.mxu1 %v1647_v40 }
 0x1bd   :  { %1454 = vmatprep.subr.bf16.mxu1 %v1648_v41 }
 0x1bf   :  { %v1680_v7 = vpop.eup %1679 }
 0x1c0   :  { %v1682_v8 = vpop.eup %1681  ;;  %1416 = vmatprep.mubr.bf16.mxu1 %v1680_v7  ;;  %1455 = vmatpush3.bf16.msra.mxu1 %v1648_v41  ;;  %v1662_v41 = vld [vmem:[#allocation3 + $0x198] sm:$0xff]  }
 0x1c1   :  { %1417 = vmatmul.mubr.bf16.gmra.mrb[4].mxu1 %v1682_v8  ;;  %1456 = vmatprep.subr.bf16.mxu1 %v1649_v28 }
 0x1c4   :  { %1457 = vmatpush3.bf16.msra.mxu1 %v1649_v28  ;;  %v1663_v28 = vld [vmem:[#allocation3 + $0x1a0] sm:$0xff]  }
 0x1c5   :  { %1458 = vmatprep.subr.bf16.mxu1 %v1650_v42 }
 0x1c8   :  { %1459 = vmatpush3.bf16.msra.mxu1 %v1650_v42  ;;  %v1664_v42 = vld [vmem:[#allocation3 + $0x1a8] sm:$0xff]  }
 0x1c9   :  { %1492 = vmatprep.subr.bf16.mxu1 %v1659_v16 }
 0x27e   :  { %v1414_v17 = vpop.f32.mrb[0].mxu1 }
 0x27f   :  { %v548_v19 = vpop.f32.mrb[1].mxu1  ;;  %v557_v21 = vadd.f32 %v1414_v17, %v1232_v18  ;;  %v1660_v17 = vld [vmem:[#allocation3 + $0x188] sm:$0xff]  }
 0x280   :  { %v1415_v20 = vpop.f32.mrb[2].mxu1  ;;  %v549_v24 = vadd.f32 %v1232_v18, %v548_v19 }
 0x281   :  { %v560_v22 = vadd.f32 %v1415_v20, %v1232_v18  ;;  %v551_v23 = vpop.f32.mrb[3].mxu1  ;;  %v1252_v20 = vld [vmem:[%s1906_s2 + $0x4] ss:$0 sm:$0xff] }
 0x282   :  { %v552_v47 = vadd.f32 %v1232_v18, %v551_v23 }
 0x283   :  { %v580_v25 = vpack.c.bf16 %v560_v22, %v557_v21 }
 0x284   :  { %v579_v26 = vpack.c.bf16 %v552_v47, %v549_v24 }
 0x286   :  { %1683 = vtanh.bf16 %v579_v26 }
 0x287   :  { %1685 = vtanh.bf16 %v580_v25 }
 0x291   :  { %v1684_v44 = vpop.eup %1683 }
 0x292   :  { %v1686_v27 = vpop.eup %1685  ;;  %1436 = vmatprep.mubr.bf16.mxu0 %v1684_v44 }
 0x293   :  { %1437 = vmatmul.mubr.bf16.vlgmr.msra.gmra.mrb[8].mxu0 %v1686_v27 }
 0x294   :  { %v1418_v29 = vpop.f32.mrb[4].mxu1  ;;  %1469 = vmatpush3.bf16.msra.mxu0 %v1651_v43  ;;  %v1665_v43 = vld [vmem:[#allocation3 + $0x1b0] sm:$0xff]  }
 0x295   :  { %v564_v30 = vpop.f32.mrb[5].mxu1  ;;  %v573_v55 = vadd.f32 %v1418_v29, %v1232_v18  ;;  %1470 = vmatprep.subr.bf16.mxu0 %v1652_v45 }
 0x296   :  { %v1419_v31 = vpop.f32.mrb[6].mxu1  ;;  %v565_v34 = vadd.f32 %v1232_v18, %v564_v30 }
 0x297   :  { %v576_v32 = vadd.f32 %v1419_v31, %v1232_v18  ;;  %v567_v33 = vpop.f32.mrb[7].mxu1 }
 0x298   :  { %v568_v35 = vadd.f32 %v1232_v18, %v567_v33  ;;  %1471 = vmatpush3.bf16.msra.mxu0 %v1652_v45  ;;  %v1661_v18 = vld [vmem:[#allocation3 + $0x190] sm:$0xff]   ;;  %v1666_v45 = vld [vmem:[#allocation3 + $0x1b8] sm:$0xff]  }
 0x299   :  { %v582_v36 = vpack.c.bf16 %v576_v32, %v573_v55  ;;  %1472 = vmatprep.subr.bf16.mxu0 %v1653_v46 }
 0x29a   :  { %v581_v37 = vpack.c.bf16 %v568_v35, %v565_v34 }
 0x29c   :  { %1687 = vtanh.bf16 %v581_v37  ;;  %1473 = vmatpush3.bf16.msra.mxu0 %v1653_v46 }
 0x29d   :  { %1689 = vtanh.bf16 %v582_v36  ;;  %1474 = vmatprep.subr.bf16.mxu0 %v1654_v11 }
 0x2a0   :  { %1475 = vmatpush3.bf16.msra.mxu0 %v1654_v11 }
 0x2a1   :  { %1476 = vmatprep.subr.bf16.mxu0 %v1655_v12 }
 0x2a4   :  { %1477 = vmatpush3.bf16.msra.mxu0 %v1655_v12 }
 0x2a5   :  { %1478 = vmatprep.subr.bf16.mxu0 %v1656_v13 }
 0x2a7   :  { %v1688_v38 = vpop.eup %1687 }
 0x2a8   :  { %v1690_v39 = vpop.eup %1689  ;;  %1440 = vmatprep.mubr.bf16.mxu0 %v1688_v38  ;;  %1479 = vmatpush3.bf16.msra.mxu0 %v1656_v13 }
 0x2a9   :  { %1441 = vmatmul.mubr.bf16.gmra.mrb[12].mxu0 %v1690_v39  ;;  %1480 = vmatprep.subr.bf16.mxu0 %v1657_v14 }
 0x2ac   :  { %1481 = vmatpush3.bf16.msra.mxu0 %v1657_v14 }
 0x2ad   :  { %1482 = vmatprep.subr.bf16.mxu0 %v1658_v15 }
 0x2b0   :  { %1483 = vmatpush3.bf16.msra.mxu0 %v1658_v15 }
 0x366   :  { %v1438_v48 = vpop.f32.mrb[8].mxu0 }
 0x367   :  { %v702_v51 = vpop.f32.mrb[9].mxu0  ;;  %v711_v53 = vadd.f32 %v1438_v48, %v1242_v50  ;;  %v1262_v48 = vld [vmem:[%s1906_s2 + $0x5] ss:$0 sm:$0xff] }
 0x368   :  { %v1439_v52 = vpop.f32.mrb[10].mxu0  ;;  %v703_v57 = vadd.f32 %v1242_v50, %v702_v51 }
 0x369   :  { %v714_v54 = vadd.f32 %v1439_v52, %v1242_v50  ;;  %v705_v56 = vpop.f32.mrb[11].mxu0 }
 0x36a   :  { %v706_v58 = vadd.f32 %v1242_v50, %v705_v56 }
 0x36b   :  { %v734_v59 = vpack.c.bf16 %v714_v54, %v711_v53 }
 0x36c   :  { %v733_v49 = vpack.c.bf16 %v706_v58, %v703_v57 }
 0x36e   :  { %1691 = vtanh.bf16 %v733_v49 }
 0x36f   :  { %1693 = vtanh.bf16 %v734_v59 }
 0x379   :  { %v1692_v61 = vpop.eup %1691 }
 0x37a   :  { %v1694_v62 = vpop.eup %1693  ;;  %1460 = vmatprep.mubr.bf16.mxu1 %v1692_v61 }
 0x37b   :  { %1461 = vmatmul.mubr.bf16.vlgmr.msra.gmra.mrb[8].mxu1 %v1694_v62 }
 0x37c   :  { %v1442_v63 = vpop.f32.mrb[12].mxu0  ;;  %1493 = vmatpush3.bf16.msra.mxu1 %v1659_v16 }
 0x37d   :  { %v718_v0 = vpop.f32.mrb[13].mxu0  ;;  %v727_v2 = vadd.f32 %v1442_v63, %v1242_v50  ;;  %1494 = vmatprep.subr.bf16.mxu1 %v1660_v17 }
 0x37e   :  { %v1443_v1 = vpop.f32.mrb[14].mxu0  ;;  %v719_v5 = vadd.f32 %v1242_v50, %v718_v0 }
 0x37f   :  { %v730_v3 = vadd.f32 %v1443_v1, %v1242_v50  ;;  %v721_v4 = vpop.f32.mrb[15].mxu0 }
 0x380   :  { %v722_v6 = vadd.f32 %v1242_v50, %v721_v4  ;;  %1495 = vmatpush3.bf16.msra.mxu1 %v1660_v17 }
 0x381   :  { %v736_v7 = vpack.c.bf16 %v730_v3, %v727_v2  ;;  %1496 = vmatprep.subr.bf16.mxu1 %v1661_v18 }
 0x382   :  { %v735_v8 = vpack.c.bf16 %v722_v6, %v719_v5 }
 0x384   :  { %1695 = vtanh.bf16 %v735_v8  ;;  %1497 = vmatpush3.bf16.msra.mxu1 %v1661_v18 }
 0x385   :  { %1697 = vtanh.bf16 %v736_v7  ;;  %1498 = vmatprep.subr.bf16.mxu1 %v1662_v41 }
 0x388   :  { %1499 = vmatpush3.bf16.msra.mxu1 %v1662_v41 }
 0x389   :  { %1500 = vmatprep.subr.bf16.mxu1 %v1663_v28 }
 0x38c   :  { %1501 = vmatpush3.bf16.msra.mxu1 %v1663_v28 }
 0x38d   :  { %1502 = vmatprep.subr.bf16.mxu1 %v1664_v42 }
 0x38f   :  { %v1696_v9 = vpop.eup %1695 }
 0x390   :  { %v1698_v10 = vpop.eup %1697  ;;  %1464 = vmatprep.mubr.bf16.mxu1 %v1696_v9  ;;  %1503 = vmatpush3.bf16.msra.mxu1 %v1664_v42 }
 0x391   :  { %1465 = vmatmul.mubr.bf16.gmra.mrb[12].mxu1 %v1698_v10  ;;  %1504 = vmatprep.subr.bf16.mxu1 %v1665_v43  ;;  %v1272_v10 = vld [vmem:[%s1906_s2 + $0x6] ss:$0 sm:$0xff]  ;;  %s1737_s2 = scalar_lea.vmem %s1209_s20, 1024 }
 0x392   :  { %p1738_p8 = scmp.ne.s32.totalorder %s1209_s20, %s1737_s2  ;;  %p1743_p10 = scmp.lt.s32.totalorder %s1737_s2, %s1737_s2 }
 0x394   :  { %1505 = vmatpush3.bf16.msra.mxu1 %v1665_v43  ;;  %p1744_p11 = por %p1743_p10, %p1742_p9 }
 0x395   :  { %1506 = vmatprep.subr.bf16.mxu1 %v1666_v45 }
 0x396   :  { %p1745_p12 = pnand %p1744_p11, %p1738_p8 }
 0x398   :  { %1507 = vmatpush3.bf16.msra.mxu1 %v1666_v45 }
 0x44e   :  { %v1462_v19 = vpop.f32.mrb[8].mxu1 }
 0x44f   :  { %v856_v21 = vpop.f32.mrb[9].mxu1  ;;  %v865_v23 = vadd.f32 %v1462_v19, %v1252_v20 }
 0x450   :  { %v1463_v22 = vpop.f32.mrb[10].mxu1  ;;  %v857_v25 = vadd.f32 %v1252_v20, %v856_v21 }
 0x451   :  { %v868_v24 = vadd.f32 %v1463_v22, %v1252_v20  ;;  %v859_v47 = vpop.f32.mrb[11].mxu1 }
 0x452   :  { %v860_v26 = vadd.f32 %v1252_v20, %v859_v47 }
 0x453   :  { %v888_v44 = vpack.c.bf16 %v868_v24, %v865_v23 }
 0x454   :  { %v887_v27 = vpack.c.bf16 %v860_v26, %v857_v25 }
 0x456   :  { %1699 = vtanh.bf16 %v887_v27 }
 0x457   :  { %1701 = vtanh.bf16 %v888_v44 }
 0x461   :  { %v1700_v29 = vpop.eup %1699 }
 0x462   :  { %v1702_v30 = vpop.eup %1701  ;;  %1484 = vmatprep.mubr.bf16.mxu0 %v1700_v29 }
 0x463   :  { %1485 = vmatmul.mubr.bf16.vlgmr.msra.gmra.mrb[16].mxu0 %v1702_v30 }
 0x464   :  { %v1466_v31 = vpop.f32.mrb[12].mxu1 }
 0x465   :  { %v872_v55 = vpop.f32.mrb[13].mxu1  ;;  %v881_v33 = vadd.f32 %v1466_v31, %v1252_v20 }
 0x466   :  { %v1467_v32 = vpop.f32.mrb[14].mxu1  ;;  %v873_v36 = vadd.f32 %v1252_v20, %v872_v55 }
 0x467   :  { %v884_v34 = vadd.f32 %v1467_v32, %v1252_v20  ;;  %v875_v35 = vpop.f32.mrb[15].mxu1 }
 0x468   :  { %v876_v37 = vadd.f32 %v1252_v20, %v875_v35 }
 0x469   :  { %v890_v38 = vpack.c.bf16 %v884_v34, %v881_v33 }
 0x46a   :  { %v889_v39 = vpack.c.bf16 %v876_v37, %v873_v36 }
 0x46c   :  { %1703 = vtanh.bf16 %v889_v39 }
 0x46d   :  { %1705 = vtanh.bf16 %v890_v38 }
 0x477   :  { %v1704_v60 = vpop.eup %1703 }
 0x478   :  { %v1706_v40 = vpop.eup %1705  ;;  %1488 = vmatprep.mubr.bf16.mxu0 %v1704_v60 }
 0x479   :  { %1489 = vmatmul.mubr.bf16.gmra.mrb[20].mxu0 %v1706_v40 }
 0x536   :  { %v1486_v46 = vpop.f32.mrb[16].mxu0 }
 0x537   :  { %v1010_v50 = vpop.f32.mrb[17].mxu0  ;;  %v1019_v52 = vadd.f32 %v1486_v46, %v1262_v48 }
 0x538   :  { %v1487_v51 = vpop.f32.mrb[18].mxu0  ;;  %v1011_v56 = vadd.f32 %v1262_v48, %v1010_v50 }
 0x539   :  { %v1022_v53 = vadd.f32 %v1487_v51, %v1262_v48  ;;  %v1013_v54 = vpop.f32.mrb[19].mxu0 }
 0x53a   :  { %v1014_v57 = vadd.f32 %v1262_v48, %v1013_v54 }
 0x53b   :  { %v1042_v58 = vpack.c.bf16 %v1022_v53, %v1019_v52 }
 0x53c   :  { %v1041_v59 = vpack.c.bf16 %v1014_v57, %v1011_v56 }
 0x53e   :  { %1707 = vtanh.bf16 %v1041_v59 }
 0x53f   :  { %1709 = vtanh.bf16 %v1042_v58 }
 0x549   :  { %v1708_v49 = vpop.eup %1707 }
 0x54a   :  { %v1710_v61 = vpop.eup %1709  ;;  %1508 = vmatprep.mubr.bf16.mxu1 %v1708_v49 }
 0x54b   :  { %1509 = vmatmul.mubr.bf16.vlgmr.msra.gmra.mrb[16].mxu1 %v1710_v61 }
 0x54c   :  { %v1490_v62 = vpop.f32.mrb[20].mxu0 }
 0x54d   :  { %v1026_v63 = vpop.f32.mrb[21].mxu0  ;;  %v1035_v1 = vadd.f32 %v1490_v62, %v1262_v48 }
 0x54e   :  { %v1491_v0 = vpop.f32.mrb[22].mxu0  ;;  %v1027_v4 = vadd.f32 %v1262_v48, %v1026_v63 }
 0x54f   :  { %v1038_v2 = vadd.f32 %v1491_v0, %v1262_v48  ;;  %v1029_v3 = vpop.f32.mrb[23].mxu0 }
 0x550   :  { %v1030_v5 = vadd.f32 %v1262_v48, %v1029_v3 }
 0x551   :  { %v1044_v6 = vpack.c.bf16 %v1038_v2, %v1035_v1 }
 0x552   :  { %v1043_v7 = vpack.c.bf16 %v1030_v5, %v1027_v4 }
 0x554   :  { %1711 = vtanh.bf16 %v1043_v7 }
 0x555   :  { %1713 = vtanh.bf16 %v1044_v6 }
 0x55f   :  { %v1712_v8 = vpop.eup %1711 }
 0x560   :  { %v1714_v9 = vpop.eup %1713  ;;  %1512 = vmatprep.mubr.bf16.mxu1 %v1712_v8 }
 0x561   :  { %1513 = vmatmul.mubr.bf16.gmra.mrb[20].mxu1 %v1714_v9 }
 0x61e   :  { %v1510_v11 = vpop.f32.mrb[16].mxu1 }
 0x61f   :  { %v1173_v12 = vadd.f32 %v1510_v11, %v1272_v10  ;;  %v1164_v13 = vpop.f32.mrb[17].mxu1 }
 0x620   :  { %v1165_v14 = vadd.f32 %v1272_v10, %v1164_v13  ;;  %v1511_v15 = vpop.f32.mrb[18].mxu1 }
 0x621   :  { %1197 = vst [vmem:[#allocation6 + $0x10] sm:$0xff] %v1173_v12  ;;  %v1176_v16 = vadd.f32 %v1511_v15, %v1272_v10  ;;  %v1167_v17 = vpop.f32.mrb[19].mxu1 }
 0x622   :  { %1195 = vst [vmem:[#allocation6] sm:$0xff] %v1165_v14  ;;  %v1168_v18 = vadd.f32 %v1272_v10, %v1167_v17 }
 0x623   :  { %1198 = vst [vmem:[#allocation6 + $0x18] sm:$0xff] %v1176_v16 }
 0x624   :  { %1196 = vst [vmem:[#allocation6 + $0x8] sm:$0xff] %v1168_v18 }
 0x634   :  { %v1514_v19 = vpop.f32.mrb[20].mxu1 }
 0x635   :  { %v1189_v20 = vadd.f32 %v1514_v19, %v1272_v10  ;;  %v1180_v21 = vpop.f32.mrb[21].mxu1 }
 0x636   :  { %v1181_v22 = vadd.f32 %v1272_v10, %v1180_v21  ;;  %v1515_v23 = vpop.f32.mrb[22].mxu1 }
 0x637   :  { %1201 = vst [vmem:[#allocation6 + $0x30] sm:$0xff] %v1189_v20  ;;  %v1192_v24 = vadd.f32 %v1515_v23, %v1272_v10  ;;  %v1183_v47 = vpop.f32.mrb[23].mxu1 }
 0x638   :  { %1199 = vst [vmem:[#allocation6 + $0x20] sm:$0xff] %v1181_v22  ;;  %v1184_v25 = vadd.f32 %v1272_v10, %v1183_v47 }
 0x639   :  { %1202 = vst [vmem:[#allocation6 + $0x38] sm:$0xff] %v1192_v24 }
 0x63a   :  { %1200 = vst [vmem:[#allocation6 + $0x28] sm:$0xff] %v1184_v25 }
 0x63b   :  { %1748 = shalt.err (!%p1745_p12)
}
 0x63c   :  { %s1749_s23 = scalar_lea.hbm %s1907_s3, 1024 }
 0x63d   :  { %p1750_p13 = scmp.ne.s32.totalorder %s1907_s3, %s1749_s23  ;;  %p1753_p0 = scmp.lt.u32.totalorder %s1749_s23, %s1907_s3 }
 0x63f   :  { %p1755_p1 = pnand %p1753_p0, %p1750_p13 }
 0x641   :  { %1758 = shalt.err (!%p1755_p1)
}
 0x642   :  { %s1771_s28 = smov 128   ;;  %s1772_s29 = smov 8  }
 0x643   :  { %1214 = dma.vmem_to_hbm [thread:$0]  %s1209_s20, 1024, %s1907_s3, [#allocation5], %s1771_s28, %s1771_s28, %s1772_s29  }
 0x644   :  { %1761 = dma.done.wait [#allocation5], 1024  }
 0x645   :  { %1762 = vsyncadd [#allocation5], 4294966272 }
 0x646   :  { %1218 = vsyncpa [#allocation4], 1 }
 0x647   :  { %1219 = vsyncpa [#allocation5], 1 }

</bundles_post_ra>
